<compile_context>
chip_gen: v6e
topology: v6e:2x2x1
jax: 0.10.0
libtpu: 0.0.40
codegen_flags: <defaults>
</compile_context>

<pallas_src>
import math
import functools
import numpy as np

import jax
import jax.numpy as jnp
from jax.experimental import pallas as pl
from jax.experimental.pallas import tpu as pltpu


# ----------------------------------------------------------------------------
# Diffusion schedule helpers (numpy glue; mirrors guided-diffusion reference)
# ----------------------------------------------------------------------------
def betas_for_alpha_bar(num_diffusion_timesteps, alpha_bar, max_beta=0.999):
    betas = []
    for i in range(num_diffusion_timesteps):
        t1 = i / num_diffusion_timesteps
        t2 = (i + 1) / num_diffusion_timesteps
        betas.append(min(1 - alpha_bar(t2) / alpha_bar(t1), max_beta))
    return np.array(betas)


def get_named_beta_schedule(schedule_name, num_diffusion_timesteps):
    assert schedule_name == "cosine"
    return betas_for_alpha_bar(
        num_diffusion_timesteps,
        lambda t: math.cos((t + 0.008) / 1.008 * math.pi / 2) ** 2,
    )


def space_timesteps(num_timesteps, section_counts):
    assert isinstance(section_counts, str) and section_counts.startswith("ddim")
    desired_count = int(section_counts[len("ddim"):])
    for i in range(1, num_timesteps):
        if len(range(0, num_timesteps, i)) == desired_count:
            return set(range(0, num_timesteps, i))
    raise ValueError(f"cannot create exactly {desired_count} steps")


# ----------------------------------------------------------------------------
# Pallas kernels
# ----------------------------------------------------------------------------
def _train_kernel(coef_ref, x_ref, n_ref, temb_ref, w_ref, xt_ref, pred_ref,
                  *, B, C):
    """Fused q_sample + synthetic denoiser for the WHOLE batch (one grid point).

    coef_ref : SMEM (B, 2)    [sqrt_alphas_cumprod[t_b], sqrt_1m_alphas_cumprod[t_b]]
    x_ref    : VMEM (B*C, HW) x_start
    n_ref    : VMEM (B*C, HW) noise
    temb_ref : VMEM (B*C, HW) time-embedding bias (host-broadcast, lane-dense)
    w_ref    : VMEM (B*C, B*C) block-diagonal 1x1-conv channel-mix weight
    xt_ref   : VMEM (B*C, HW) q_sample output
    pred_ref : VMEM (B*C, HW) predicted heatmap
    """
    parts = []
    for b in range(B):                                 # tiny static unroll
        a = coef_ref[b, 0]
        s = coef_ref[b, 1]
        parts.append(a * x_ref[b * C:(b + 1) * C, :]
                     + s * n_ref[b * C:(b + 1) * C, :])
    x_t = jnp.concatenate(parts, axis=0)               # (B*C, HW), q_sample
    xt_ref[...] = x_t
    # one (B*C,B*C)@(B*C,HW) MXU push covers the whole batch
    y = jnp.dot(w_ref[...], x_t, preferred_element_type=jnp.float32)
    pred_ref[...] = jnp.maximum(y + temb_ref[...], 0.0)


def _ddim_loop_kernel(coef_ref, noise_ref, temb_ref, w_ref, pred_ref, img_ref):
    """Entire DDIM sampling loop fused into one pallas_call; grid=(T,).

    The carried sample `img` stays resident in a VMEM scratch across grid
    steps; only the final prediction is written back to HBM.

    coef_ref : SMEM (T, 8)   per-step [sqrt_recip_ac, 1/sqrt_recipm1_ac,
               sqrt(ab_prev), sqrt(1-ab_prev-sigma^2), sigma, nonzero, 0, 0]
    noise_ref: VMEM (B*C, HW)    initial sample (generation noise), fetched once
    temb_ref : VMEM (1, B*C, HW) this step's time-embedding bias
    w_ref    : VMEM (B*C, B*C)   block-diagonal channel-mix weight
    pred_ref : VMEM (B*C, HW)    output: last step's prediction survives
    img_ref  : VMEM scratch (B*C, HW) carried sample
    """
    step = pl.program_id(0)

    @pl.when(step == 0)
    def _():
        img_ref[...] = noise_ref[...]

    x_t = img_ref[...]
    # synthetic denoiser ("poseseg"): 1x1 conv (channel mix) + temb bias + ReLU
    y = jnp.dot(w_ref[...], x_t, preferred_element_type=jnp.float32)
    pred = jnp.maximum(y + temb_ref[0], 0.0)
    pred_ref[...] = pred

    # fused DDIM update (eta == 0 -> sigma == 0, stochastic term exactly zero)
    c_recip = coef_ref[step, 0]
    c_recipm1_inv = coef_ref[step, 1]
    c_sqrt_ab_prev = coef_ref[step, 2]
    c_dir = coef_ref[step, 3]
    eps = (c_recip * x_t - pred) * c_recipm1_inv
    img_ref[...] = pred * c_sqrt_ab_prev + c_dir * eps


# ----------------------------------------------------------------------------
# Model
# ----------------------------------------------------------------------------
class InterhumanDiffusionPallas:
    def __init__(self, num_channels=8, heat_hw=(16, 16),
                 num_timesteps=100, timestep_respacing="ddim5"):
        self.C = num_channels
        self.H, self.W = heat_hw
        self.HW = self.H * self.W
        self.training = True
        self.eval_initialized = False
        self.timestep_respacing = timestep_respacing

        betas = np.array(get_named_beta_schedule("cosine", num_timesteps),
                         dtype=np.float64)
        assert len(betas.shape) == 1 and (betas > 0).all() and (betas <= 1).all()
        self.betas = betas
        self.num_timesteps = int(betas.shape[0])
        alphas = 1.0 - betas
        self.alphas_cumprod = np.cumprod(alphas, axis=0)
        self.alphas_cumprod_prev = np.append(1.0, self.alphas_cumprod[:-1])
        self.alphas_cumprod_next = np.append(self.alphas_cumprod[1:], 0.0)
        self.sqrt_alphas_cumprod = np.sqrt(self.alphas_cumprod)
        self.sqrt_one_minus_alphas_cumprod = np.sqrt(1.0 - self.alphas_cumprod)
        self.log_one_minus_alphas_cumprod = np.log(1.0 - self.alphas_cumprod)
        self.sqrt_recip_alphas_cumprod = np.sqrt(1.0 / self.alphas_cumprod)
        self.sqrt_recipm1_alphas_cumprod = np.sqrt(1.0 / self.alphas_cumprod - 1)

        # TODO(synk): PoseNet / segnet / Res_catconv are external & undefined in
        # the reference file; use a deterministic synthetic 1x1-conv denoiser.
        kw = jax.random.PRNGKey(42)
        self.w_mix = (0.05 * jax.random.normal(kw, (self.C, self.C), jnp.float32)
                      + jnp.eye(self.C, dtype=jnp.float32))
        self._w_bd_cache = {}

        # device-side schedule tables (f32, matching extract_into_tensor().float())
        self._sqrt_ac = jnp.asarray(self.sqrt_alphas_cumprod, jnp.float32)
        self._sqrt_1mac = jnp.asarray(self.sqrt_one_minus_alphas_cumprod, jnp.float32)

    # ------------------------------------------------------------------ eval init
    def init_eval(self):
        use_timesteps = set(space_timesteps(self.num_timesteps, self.timestep_respacing))
        self.timestep_map = []
        last_alpha_cumprod = 1.0
        new_betas = []
        for i, alpha_cumprod in enumerate(self.alphas_cumprod):
            if i in use_timesteps:
                new_betas.append(1 - alpha_cumprod / last_alpha_cumprod)
                last_alpha_cumprod = alpha_cumprod
                self.timestep_map.append(i)
        self.test_betas = np.array(new_betas)
        self.num_timesteps_test = int(self.test_betas.shape[0])
        test_alphas = 1.0 - self.test_betas
        self.test_alphas_cumprod = np.cumprod(test_alphas, axis=0)
        self.test_alphas_cumprod_prev = np.append(1.0, self.test_alphas_cumprod[:-1])
        self.test_alphas_cumprod_next = np.append(self.test_alphas_cumprod[1:], 0.0)
        self.testsqrt_alphas_cumprod = np.sqrt(self.test_alphas_cumprod)
        self.test_sqrt_one_minus_alphas_cumprod = np.sqrt(1.0 - self.test_alphas_cumprod)
        self.test_log_one_minus_alphas_cumprod = np.log(1.0 - self.test_alphas_cumprod)
        self.test_sqrt_recip_alphas_cumprod = np.sqrt(1.0 / self.test_alphas_cumprod)
        self.test_sqrt_recipm1_alphas_cumprod = np.sqrt(1.0 / self.test_alphas_cumprod - 1)
        self.test_posterior_variance = (self.test_betas
                                        * (1.0 - self.test_alphas_cumprod_prev)
                                        / (1.0 - self.test_alphas_cumprod))
        self.test_posterior_log_variance_clipped = np.log(
            np.append(self.test_posterior_variance[1], self.test_posterior_variance[1:]))
        self.test_posterior_mean_coef1 = (self.test_betas
                                          * np.sqrt(self.test_alphas_cumprod_prev)
                                          / (1.0 - self.test_alphas_cumprod))
        self.test_posterior_mean_coef2 = ((1.0 - self.test_alphas_cumprod_prev)
                                          * np.sqrt(test_alphas)
                                          / (1.0 - self.test_alphas_cumprod))

    def eval(self):
        self.training = False

    # ------------------------------------------------------------------ helpers
    def _block_diag_weight(self, B):
        if B not in self._w_bd_cache:
            self._w_bd_cache[B] = jnp.kron(jnp.eye(B, dtype=jnp.float32), self.w_mix)
        return self._w_bd_cache[B]

    def _time_embed(self, t):
        # sinusoidal timestep embedding -> (N, C)
        half = self.C // 2
        freqs = jnp.exp(-jnp.arange(half, dtype=jnp.float32)
                        * (math.log(10000.0) / max(half - 1, 1)))
        ang = t.astype(jnp.float32)[:, None] * freqs[None, :]
        return jnp.concatenate([jnp.sin(ang), jnp.cos(ang)], axis=-1)

    # ------------------------------------------------------------------ pallas wrappers
    def _train_pallas(self, x2d, n2d, coef, temb2d, w_bd):
        BC, HW = x2d.shape
        B = coef.shape[0]
        C = BC // B
        kernel = functools.partial(_train_kernel, B=B, C=C)
        return pl.pallas_call(
            kernel,
            out_shape=(jax.ShapeDtypeStruct((BC, HW), jnp.float32),
                       jax.ShapeDtypeStruct((BC, HW), jnp.float32)),
            grid_spec=pltpu.PrefetchScalarGridSpec(
                num_scalar_prefetch=0,
                grid=(1,),
                in_specs=[
                    pl.BlockSpec(memory_space=pltpu.MemorySpace.SMEM),  # coef (B, 2)
                    pl.BlockSpec((BC, HW), lambda i: (0, 0)),           # x_start
                    pl.BlockSpec((BC, HW), lambda i: (0, 0)),           # noise
                    pl.BlockSpec((BC, HW), lambda i: (0, 0)),           # temb bias
                    pl.BlockSpec((BC, BC), lambda i: (0, 0)),           # block-diag weight
                ],
                out_specs=(pl.BlockSpec((BC, HW), lambda i: (0, 0)),
                           pl.BlockSpec((BC, HW), lambda i: (0, 0))),
            ),
            compiler_params=pltpu.CompilerParams(dimension_semantics=("arbitrary",)),
        )(coef, x2d, n2d, temb2d, w_bd)

    def _ddim_loop_pallas(self, img0_2d, coef_tab, temb_tab, w_bd):
        BC, HW = img0_2d.shape
        T = coef_tab.shape[0]
        return pl.pallas_call(
            _ddim_loop_kernel,
            out_shape=jax.ShapeDtypeStruct((BC, HW), jnp.float32),
            grid_spec=pltpu.PrefetchScalarGridSpec(
                num_scalar_prefetch=0,
                grid=(T,),
                in_specs=[
                    pl.BlockSpec(memory_space=pltpu.MemorySpace.SMEM),  # coef (T, 8)
                    pl.BlockSpec((BC, HW), lambda s: (0, 0)),           # initial img
                    pl.BlockSpec((1, BC, HW), lambda s: (s, 0, 0)),     # per-step temb
                    pl.BlockSpec((BC, BC), lambda s: (0, 0)),           # weight
                ],
                out_specs=pl.BlockSpec((BC, HW), lambda s: (0, 0)),
                scratch_shapes=[pltpu.VMEM((BC, HW), jnp.float32)],     # carried img
            ),
            compiler_params=pltpu.CompilerParams(dimension_semantics=("arbitrary",)),
        )(coef_tab, img0_2d, temb_tab, w_bd)

    # ------------------------------------------------------------------ model pieces
    def condition_process(self, data):
        return data["img"]

    def input_process(self, data):
        return data["gt_heat"]

    def generate_noise(self, init_pose, key):
        return jax.random.normal(key, init_pose.shape, init_pose.dtype)

    # ------------------------------------------------------------------ forward
    def forward(self, data, rng):
        batch_size = data["img"].shape[0]
        cond = self.condition_process(data)   # consumed by the real (undefined) backbone
        init_pose = data["gt_heat"][-1]       # (B, C, H, W)
        k_noise, k_t, k_loop = jax.random.split(rng, 3)
        noise = self.generate_noise(init_pose, k_noise)

        B, C, H, W = init_pose.shape
        HW = H * W
        w_bd = self._block_diag_weight(B)

        if self.training:
            x_start = self.input_process(data)[-1]            # (B, C, H, W)
            # UniformSampler.sample
            t = jax.random.randint(k_t, (batch_size,), 0, self.num_timesteps)
            coef = jnp.stack([self._sqrt_ac[t], self._sqrt_1mac[t]], axis=-1)  # (B, 2)
            temb = self._time_embed(t)                                         # (B, C)
            temb2d = jnp.broadcast_to(temb.reshape(B * C, 1), (B * C, HW))
            x2d = x_start.reshape(B * C, HW)
            n2d = noise.reshape(B * C, HW)
            xt2d, pred2d = self._train_pallas(x2d, n2d, coef, temb2d, w_bd)
            self._dbg_train = dict(x2d=x2d, n2d=n2d, coef=coef, temb2d=temb2d,
                                   w_bd=w_bd, xt=xt2d, pred=pred2d)
            return {"preheat": [pred2d.reshape(B, C, H, W)],
                    "x_t": xt2d.reshape(B, C, H, W),
                    "t": t}
        else:
            if not self.eval_initialized:
                self.init_eval()
                self.eval_initialized = True
            return self.ddim_sample_loop(noise, cond, data, k_loop)

    def ddim_sample_loop(self, noise, cond, data, rng, eta=0.0):
        # rng unused: with eta == 0 the stochastic term nonzero_mask*sigma*noise
        # is exactly zero, so it is elided (matches the reference result).
        # TODO(synk): for eta > 0, pass a (T, B*C, HW) noise table blocked along
        # the step axis and add nz*sigma*noise inside _ddim_loop_kernel.
        del rng
        B, C, H, W = noise.shape
        HW = H * W
        T = self.num_timesteps_test
        w_bd = self._block_diag_weight(B)

        # Per-step DDIM coefficient table, built in reverse-time (loop) order.
        coef_rows = []
        new_ts = []
        for s in range(T):
            i = T - 1 - s
            alpha_bar = float(self.test_alphas_cumprod[i])
            alpha_bar_prev = float(self.test_alphas_cumprod_prev[i])
            sigma = (eta * math.sqrt((1 - alpha_bar_prev) / (1 - alpha_bar))
                     * math.sqrt(1 - alpha_bar / alpha_bar_prev))
            coef_rows.append([
                float(self.test_sqrt_recip_alphas_cumprod[i]),
                1.0 / float(self.test_sqrt_recipm1_alphas_cumprod[i]),
                math.sqrt(alpha_bar_prev),
                math.sqrt(max(1.0 - alpha_bar_prev - sigma ** 2, 0.0)),
                sigma,
                1.0 if i != 0 else 0.0,
                0.0, 0.0,
            ])
            new_ts.append(self.timestep_map[i])       # ddim_sample's new_ts
        coef_tab = jnp.asarray(np.array(coef_rows, dtype=np.float32))   # (T, 8)

        # Per-step time-embedding bias table, lane-dense (T, B*C, HW).
        emb = self._time_embed(jnp.asarray(np.array(new_ts, np.int32)))  # (T, C)
        emb_bc = jnp.tile(emb, (1, B))                                   # (T, B*C)
        temb_tab = jnp.broadcast_to(emb_bc[:, :, None], (T, B * C, HW))

        img0 = noise.reshape(B * C, HW)
        pred2d = self._ddim_loop_pallas(img0, coef_tab, temb_tab, w_bd)
        self._dbg_eval = dict(img0=img0, coef_tab=coef_tab, temb_tab=temb_tab,
                              w_bd=w_bd, pred=pred2d)
        # reference returns preds[-1] == last step's prediction
        return {"preheat": [pred2d.reshape(B, C, H, W)]}


# ----------------------------------------------------------------------------
# Main
# ----------------------------------------------------------------------------
if __name__ == "__main__":
    key = jax.random.PRNGKey(0)
    k_img, k_heat, k_fwd = jax.random.split(key, 3)

    B, C, H, W, L = 2, 8, 16, 16, 2
    data = {
        "img": jax.random.normal(k_img, (B, 3, 64, 64), jnp.float32),        # cond image
        "gt_heat": jax.random.normal(k_heat, (L, B, C, H, W), jnp.float32),  # heatmap pyramid
    }

    model = InterhumanDiffusionPallas(num_channels=C, heat_hw=(H, W))

    # --- training-mode forward (fused q_sample + denoiser, single pallas_call) ---
    out_train = model.forward(data, k_fwd)
    jax.block_until_ready(out_train["preheat"][0])

    dbg = model._dbg_train
    a_col = jnp.repeat(dbg["coef"][:, 0], C)[:, None]
    s_col = jnp.repeat(dbg["coef"][:, 1], C)[:, None]
    xt_ref = a_col * dbg["x2d"] + s_col * dbg["n2d"]
    pred_ref = jnp.maximum(dbg["w_bd"] @ xt_ref + dbg["temb2d"], 0.0)
    assert jnp.allclose(dbg["xt"], xt_ref, atol=1e-5, rtol=1e-5)
    assert jnp.allclose(dbg["pred"], pred_ref, atol=1e-3, rtol=1e-3)

    # --- eval-mode forward (whole DDIM loop fused into one pallas_call) ---
    model.eval()
    out_eval = model.forward(data, k_fwd)
    res = jax.block_until_ready(out_eval["preheat"][0])
    assert bool(jnp.all(jnp.isfinite(res)))

    dbg = model._dbg_eval
    img = dbg["img0"]
    pred_r = None
    for st in range(dbg["coef_tab"].shape[0]):
        pred_r = jnp.maximum(dbg["w_bd"] @ img + dbg["temb_tab"][st], 0.0)
        c = dbg["coef_tab"][st]
        eps = (c[0] * img - pred_r) * c[1]
        img = pred_r * c[2] + c[3] * eps
    assert jnp.allclose(dbg["pred"], pred_r, atol=5e-3, rtol=5e-3)

    print("KERNEL_OK")
</pallas_src>

<mosaic_0001>
module attributes {stable_mosaic.version = 11 : i64} {
  func.func @_train_kernel(%arg0: i32, %arg1: memref<2x2xf32, #tpu.memory_space<smem>>, %arg2: memref<16x256xf32, #tpu.memory_space<vmem>>, %arg3: memref<16x256xf32, #tpu.memory_space<vmem>>, %arg4: memref<16x256xf32, #tpu.memory_space<vmem>>, %arg5: memref<16x16xf32, #tpu.memory_space<vmem>>, %arg6: memref<16x256xf32, #tpu.memory_space<vmem>>, %arg7: memref<16x256xf32, #tpu.memory_space<vmem>>) attributes {dimension_semantics = [#tpu.dimension_semantics<arbitrary>], iteration_bounds = array<i64: 1>, scalar_prefetch = 0 : i64, scratch_operands = 0 : i64, tpu.core_type = #tpu.core_type<tc>, window_params = [{transform_indices = @transform_0, window_bounds = array<i64: 2, 2>}, {pipeline_mode = #tpu.pipeline_mode<synchronous>, transform_indices = @transform_1, window_bounds = array<i64: 16, 256>}, {pipeline_mode = #tpu.pipeline_mode<synchronous>, transform_indices = @transform_2, window_bounds = array<i64: 16, 256>}, {pipeline_mode = #tpu.pipeline_mode<synchronous>, transform_indices = @transform_3, window_bounds = array<i64: 16, 256>}, {pipeline_mode = #tpu.pipeline_mode<synchronous>, transform_indices = @transform_4, window_bounds = array<i64: 16, 16>}, {pipeline_mode = #tpu.pipeline_mode<synchronous>, transform_indices = @transform_5, window_bounds = array<i64: 16, 256>}, {pipeline_mode = #tpu.pipeline_mode<synchronous>, transform_indices = @transform_6, window_bounds = array<i64: 16, 256>}]} {
    %c0 = arith.constant 0 : index
    %c0_0 = arith.constant 0 : index
    %0 = memref.load %arg1[%c0, %c0_0] : memref<2x2xf32, #tpu.memory_space<smem>>
    %c0_1 = arith.constant 0 : index
    %c1 = arith.constant 1 : index
    %1 = memref.load %arg1[%c0_1, %c1] : memref<2x2xf32, #tpu.memory_space<smem>>
    %c0_2 = arith.constant 0 : index
    %c0_3 = arith.constant 0 : index
    %2 = vector.load %arg2[%c0_2, %c0_3] : memref<16x256xf32, #tpu.memory_space<vmem>>, vector<8x256xf32>
    %3 = vector.broadcast %0 : f32 to vector<8x256xf32>
    %4 = arith.mulf %3, %2 : vector<8x256xf32>
    %c0_4 = arith.constant 0 : index
    %c0_5 = arith.constant 0 : index
    %5 = vector.load %arg3[%c0_4, %c0_5] : memref<16x256xf32, #tpu.memory_space<vmem>>, vector<8x256xf32>
    %6 = vector.broadcast %1 : f32 to vector<8x256xf32>
    %7 = arith.mulf %6, %5 : vector<8x256xf32>
    %8 = arith.addf %4, %7 : vector<8x256xf32>
    %c1_6 = arith.constant 1 : index
    %c0_7 = arith.constant 0 : index
    %9 = memref.load %arg1[%c1_6, %c0_7] : memref<2x2xf32, #tpu.memory_space<smem>>
    %c1_8 = arith.constant 1 : index
    %c1_9 = arith.constant 1 : index
    %10 = memref.load %arg1[%c1_8, %c1_9] : memref<2x2xf32, #tpu.memory_space<smem>>
    %c8 = arith.constant 8 : index
    %c0_10 = arith.constant 0 : index
    %11 = vector.load %arg2[%c8, %c0_10] : memref<16x256xf32, #tpu.memory_space<vmem>>, vector<8x256xf32>
    %12 = vector.broadcast %9 : f32 to vector<8x256xf32>
    %13 = arith.mulf %12, %11 : vector<8x256xf32>
    %c8_11 = arith.constant 8 : index
    %c0_12 = arith.constant 0 : index
    %14 = vector.load %arg3[%c8_11, %c0_12] : memref<16x256xf32, #tpu.memory_space<vmem>>, vector<8x256xf32>
    %15 = vector.broadcast %10 : f32 to vector<8x256xf32>
    %16 = arith.mulf %15, %14 : vector<8x256xf32>
    %17 = arith.addf %13, %16 : vector<8x256xf32>
    %18 = tpu.concatenate %8, %17 in 0 : vector<8x256xf32>, vector<8x256xf32> -> vector<16x256xf32>
    %c0_13 = arith.constant 0 : index
    %c0_14 = arith.constant 0 : index
    %19 = vector.load %arg6[%c0_13, %c0_14] : memref<16x256xf32, #tpu.memory_space<vmem>>, vector<16x256xf32>
    tpu.vector_store %arg6[%c0_13, %c0_14], %18 {strides = array<i32>} : memref<16x256xf32, #tpu.memory_space<vmem>>, vector<16x256xf32>,
    %c0_15 = arith.constant 0 : index
    %c0_16 = arith.constant 0 : index
    %20 = vector.load %arg5[%c0_15, %c0_16] : memref<16x16xf32, #tpu.memory_space<vmem>>, vector<16x16xf32>
    %cst = arith.constant dense<0.000000e+00> : vector<16x256xf32>
    %21 = tpu.matmul %20, %18, %cst {dimension_numbers = #tpu.dot_dimension_numbers<[1], [0], [0], [1], [0, 0, 1, 1], [], []>} : vector<16x16xf32>, vector<16x256xf32>, vector<16x256xf32> -> vector<16x256xf32>
    %c0_17 = arith.constant 0 : index
    %c0_18 = arith.constant 0 : index
    %22 = vector.load %arg4[%c0_17, %c0_18] : memref<16x256xf32, #tpu.memory_space<vmem>>, vector<16x256xf32>
    %23 = arith.addf %21, %22 : vector<16x256xf32>
    %cst_19 = arith.constant 0.000000e+00 : f32
    %24 = vector.broadcast %cst_19 : f32 to vector<16x256xf32>
    %25 = arith.maximumf %23, %24 : vector<16x256xf32>
    %c0_20 = arith.constant 0 : index
    %c0_21 = arith.constant 0 : index
    %26 = vector.load %arg7[%c0_20, %c0_21] : memref<16x256xf32, #tpu.memory_space<vmem>>, vector<16x256xf32>
    tpu.vector_store %arg7[%c0_20, %c0_21], %25 {strides = array<i32>} : memref<16x256xf32, #tpu.memory_space<vmem>>, vector<16x256xf32>,
    return
  }
  func.func @transform_0(%arg0: i32) -> (i32, i32) {
    %c0_i32 = arith.constant 0 : i32
    %c0_i32_0 = arith.constant 0 : i32
    %c0_i32_1 = arith.constant 0 : i32
    return %c0_i32, %c0_i32_0 : i32, i32
  }
  func.func @transform_1(%arg0: i32) -> (i32, i32) {
    %c0_i32 = arith.constant 0 : i32
    %c0_i32_0 = arith.constant 0 : i32
    %c0_i32_1 = arith.constant 0 : i32
    return %c0_i32, %c0_i32_0 : i32, i32
  }
  func.func @transform_2(%arg0: i32) -> (i32, i32) {
    %c0_i32 = arith.constant 0 : i32
    %c0_i32_0 = arith.constant 0 : i32
    %c0_i32_1 = arith.constant 0 : i32
    return %c0_i32, %c0_i32_0 : i32, i32
  }
  func.func @transform_3(%arg0: i32) -> (i32, i32) {
    %c0_i32 = arith.constant 0 : i32
    %c0_i32_0 = arith.constant 0 : i32
    %c0_i32_1 = arith.constant 0 : i32
    return %c0_i32, %c0_i32_0 : i32, i32
  }
  func.func @transform_4(%arg0: i32) -> (i32, i32) {
    %c0_i32 = arith.constant 0 : i32
    %c0_i32_0 = arith.constant 0 : i32
    %c0_i32_1 = arith.constant 0 : i32
    return %c0_i32, %c0_i32_0 : i32, i32
  }
  func.func @transform_5(%arg0: i32) -> (i32, i32) {
    %c0_i32 = arith.constant 0 : i32
    %c0_i32_0 = arith.constant 0 : i32
    %c0_i32_1 = arith.constant 0 : i32
    return %c0_i32, %c0_i32_0 : i32, i32
  }
  func.func @transform_6(%arg0: i32) -> (i32, i32) {
    %c0_i32 = arith.constant 0 : i32
    %c0_i32_0 = arith.constant 0 : i32
    %c0_i32_1 = arith.constant 0 : i32
    return %c0_i32, %c0_i32_0 : i32, i32
  }
}

</mosaic_0001>

<bundles_post_ra>
// kernel: tpu_custom_call.1
= control target key start
LH: loop header
LB: loop body
LE: loop exit
PB: predicated region body
PF: predicated region fallthrough
CT: control target
= control target key end

     0   :  { %12 = vsyncpa [#allocation5], 0  ;;  %s500_s0 = inlined_call_operand.hbm [shape: f32[2,2], index: 0, kind: input, shape index: {}]   ;;  %s501_s1 = inlined_call_operand.hbm [shape: f32[16,256], index: 1, kind: input, shape index: {}]   ;;  %s502_s2 = inlined_call_operand.hbm [shape: f32[16,256], index: 2, kind: input, shape index: {}]   ;;  %s503_s3 = inlined_call_operand.hbm [shape: f32[16,256], index: 3, kind: input, shape index: {}]   ;;  %s504_s4 = inlined_call_operand.hbm [shape: f32[16,16], index: 4, kind: input, shape index: {}]   ;;  %s505_s5 = inlined_call_operand.hbm [shape: f32[16,256], index: 5, kind: output, shape index: {0}]   ;;  %s506_s6 = inlined_call_operand.hbm [shape: f32[16,256], index: 6, kind: output, shape index: {1}]  }
   0x1   :  { %13 = vsyncpa [#allocation3], 0 }
   0x2   :  { %14 = vsyncpa [#allocation8], 0 }
   0x3   :  { %15 = vsyncpa [#allocation11], 0 }
   0x4   :  { %16 = vsyncpa [#allocation4], 0 }
   0x5   :  { %17 = vsyncpa [#allocation14], 0  ;;  %s417_s21 = smov [#allocation7]   ;;  %s418_s23 = smov [#allocation6]  }
   0x6   :  { %s43_s22 = sshll.u32 %s417_s21, 4  ;;  %s31_s24 = sshll.u32 %s418_s23, 4  ;;  %s44_s22 = int_to_ptr.vmem [resolvable:$true] %s43_s22  ;;  %s32_s24 = int_to_ptr.vmem [resolvable:$true] %s31_s24 }
   0x7   :  { %s285_s25 = scalar_lea.vmem %s44_s22, 512  ;;  %p290_p1 = scmp.lt.s32.totalorder %s44_s22, %s44_s22 }
   0x8   :  { %p286_p0 = scmp.ne.s32.totalorder %s44_s22, %s285_s25  ;;  %p291_p2 = scmp.lt.s32.totalorder %s285_s25, %s285_s25 }
   0xa   :  { %p292_p3 = por %p291_p2, %p290_p1 }
   0xc   :  { %p293_p4 = pnand %p292_p3, %p286_p0 }
   0xe   :  { %296 = shalt.err (!%p293_p4)
}
   0xf   :  { %s419_s26 = smov 256   ;;  %s420_s27 = smov 16  }
  0x10   :  { %49 = dma.hbm_to_vmem [thread:$0]  %s502_s2, 512, %s44_s22, [#allocation8], %s419_s26, %s419_s26, %s420_s27  }
  0x11   :  { %s421_s30 = smov [#allocation2]   ;;  %s313_s9 = scalar_lea.vmem %s32_s24, 512 }
  0x12   :  { %25 = dma.hbm_to_smem %s500_s0, 32, %s421_s30, [#allocation5]  }
  0x13   :  { %p314_p5 = scmp.ne.s32.totalorder %s32_s24, %s313_s9  ;;  %p318_p6 = scmp.lt.s32.totalorder %s32_s24, %s32_s24 }
  0x14   :  { %p319_p7 = scmp.lt.s32.totalorder %s313_s9, %s313_s9 }
  0x16   :  { %p320_p8 = por %p319_p7, %p318_p6 }
  0x18   :  { %p321_p9 = pnand %p320_p8, %p314_p5 }
  0x1a   :  { %324 = shalt.err (!%p321_p9)
}
  0x1b   :  { %37 = dma.hbm_to_vmem [thread:$0]  %s501_s1, 512, %s32_s24, [#allocation3], %s419_s26, %s419_s26, %s420_s27  }
  0x1c   :  { %s422_s2 = smov [#allocation9]   ;;  %s423_s13 = smov [#allocation10]  }
  0x1d   :  { %s55_s12 = sshll.u32 %s422_s2, 4  ;;  %s67_s0 = sshll.u32 %s423_s13, 4  ;;  %s56_s12 = int_to_ptr.vmem [resolvable:$true] %s55_s12  ;;  %s68_s0 = int_to_ptr.vmem [resolvable:$true] %s67_s0 }
  0x1e   :  { %s333_s14 = scalar_lea.vmem %s56_s12, 512  ;;  %p338_p11 = scmp.lt.s32.totalorder %s56_s12, %s56_s12 }
  0x1f   :  { %p334_p10 = scmp.ne.s32.totalorder %s56_s12, %s333_s14  ;;  %p339_p12 = scmp.lt.s32.totalorder %s333_s14, %s333_s14 }
  0x21   :  { %p340_p13 = por %p339_p12, %p338_p11 }
  0x23   :  { %p341_p0 = pnand %p340_p13, %p334_p10 }
  0x25   :  { %344 = shalt.err (!%p341_p0)
}
  0x26   :  { %61 = dma.hbm_to_vmem [thread:$0]  %s503_s3, 512, %s56_s12, [#allocation8], %s419_s26, %s419_s26, %s420_s27  }
  0x27   :  { %s353_s1 = scalar_lea.vmem %s68_s0, 256  ;;  %p358_p2 = scmp.lt.s32.totalorder %s68_s0, %s68_s0 }
  0x28   :  { %p354_p1 = scmp.ne.s32.totalorder %s68_s0, %s353_s1  ;;  %p359_p3 = scmp.lt.s32.totalorder %s353_s1, %s353_s1 }
  0x2a   :  { %p360_p4 = por %p359_p3, %p358_p2 }
  0x2c   :  { %p361_p5 = pnand %p360_p4, %p354_p1 }
  0x2e   :  { %364 = shalt.err (!%p361_p5)
}
  0x2f   :  { %s424_s17 = smov 128   ;;  %s425_s18 = smov 8  }
  0x30   :  { %73 = dma.hbm_to_vmem [thread:$0]  %s504_s4, 256, %s68_s0, [#allocation11], %s424_s17, %s424_s17, %s425_s18  }
  0x31   :  { %405 = dma.done.wait [#allocation5], 32  }
  0x32   :  { %406 = vsyncadd [#allocation5], 4294967264 }
  0x33   :  { %407 = dma.done.wait [#allocation3], 512  }
  0x34   :  { %408 = vsyncadd [#allocation3], 4294966784 }
  0x35   :  { %409 = dma.done.wait [#allocation8], 1024  }
  0x36   :  { %410 = vsyncadd [#allocation8], 4294966272 }
  0x37   :  { %411 = dma.done.wait [#allocation11], 256  }
  0x38   :  { %412 = vsyncadd [#allocation11], 4294967040 }
  0x39   :  { %89 = sfence }
  0x3a   :  { %s257_s3 = sld [smem:[#allocation2 + $0x80]]  ;;  %v426_v0 = vmov 0.0   ;;  %v107_v1 = vld [vmem:[#allocation6 + $0x18] sm:$0xff]  ;;  %v106_v2 = vld [vmem:[#allocation6 + $0x10] sm:$0xff]  ;;  %v93_v6 = vld [vmem:[#allocation6 + $0x8] sm:$0xff]  ;;  %vm128_vm0 = vcmask 130048  }
  0x3b   :  { %s258_s21 = sld [smem:[#allocation2 + $0x81]]  ;;  %199 = vmatprep.mubr.f32.mxu0 %v426_v0  ;;  %205 = vmatprep.mubr.f32.mxu1 %v426_v0  ;;  %v112_v3 = vld [vmem:[#allocation7 + $0x18] sm:$0xff]  ;;  %v111_v4 = vld [vmem:[#allocation7 + $0x10] sm:$0xff]  ;;  %v92_v7 = vld [vmem:[#allocation6] sm:$0xff]  ;;  %s427_s4 = smov [#allocation12]  }
  0x3c   :  { %s90_s22 = sld [smem:[#allocation2]]  ;;  %v98_v11 = vld [vmem:[#allocation7 + $0x8] sm:$0xff]  ;;  %v97_v12 = vld [vmem:[#allocation7] sm:$0xff]  ;;  %s225_s24 = sshll.u32 %s427_s4, 4  ;;  %s226_s24 = int_to_ptr.vmem [resolvable:$true] %s225_s24 }
  0x3d   :  { %s256_s23 = sld [smem:[#allocation2 + $0x1]]  ;;  %v122_v25 = vld [vmem:[#allocation10] sm:$0xff]  ;;  %v123_v26 = vld [vmem:[#allocation10 + $0x8] sm:$0xff]  ;;  %s365_s25 = scalar_lea.vmem %s226_s24, 512 }
  0x3e   :  { %p366_p6 = scmp.ne.s32.totalorder %s226_s24, %s365_s25  ;;  %p370_p7 = scmp.lt.s32.totalorder %s226_s24, %s226_s24 }
  0x3f   :  { %p371_p8 = scmp.lt.s32.totalorder %s365_s25, %s365_s25 }
  0x40   :  { %v108_v5 = vstv %s257_s3 }
  0x41   :  { %v110_v8 = vmul.f32 %v108_v5, %v107_v1  ;;  %v113_v9 = vstv %s258_s21  ;;  %v109_v10 = vmul.f32 %v108_v5, %v106_v2  ;;  %p372_p9 = por %p371_p8, %p370_p7 }
  0x42   :  { %v115_v13 = vmul.f32 %v113_v9, %v112_v3  ;;  %v114_v14 = vmul.f32 %v113_v9, %v111_v4  ;;  %v94_v15 = vstv %s90_s22 }
  0x43   :  { %v96_v16 = vmul.f32 %v94_v15, %v93_v6  ;;  %v99_v17 = vstv %s256_s23  ;;  %v95_v18 = vmul.f32 %v94_v15, %v92_v7  ;;  %p373_p10 = pnand %p372_p9, %p366_p6 }
  0x44   :  { %v117_v19 = vadd.f32 %v115_v13, %v110_v8  ;;  %v116_v20 = vadd.f32 %v114_v14, %v109_v10  ;;  %v101_v21 = vmul.f32 %v99_v17, %v98_v11  ;;  %v100_v22 = vmul.f32 %v99_v17, %v97_v12 }
  0x46   :  { %163 = vmatprep.subr.mxu0 %v117_v19  ;;  %121 = vst [vmem:[#allocation12 + $0x18] sm:$0xff] %v117_v19  ;;  %261 = vmatprep.subr.mxu1 %v117_v19  ;;  %120 = vst [vmem:[#allocation12 + $0x10] sm:$0xff] %v116_v20  ;;  %v103_v23 = vadd.f32 %v101_v21, %v96_v16  ;;  %v102_v24 = vadd.f32 %v100_v22, %v95_v18 }
  0x47   :  { %164 = vmatpush1.msra.mxu0 %v116_v20  ;;  %263 = vmatpush1.msra.mxu1 %v116_v20 }
  0x48   :  { %165 = vmatprep.subr.mxu0 %v103_v23  ;;  %119 = vst [vmem:[#allocation12 + $0x8] sm:$0xff] %v103_v23  ;;  %262 = vmatprep.subr.mxu1 %v103_v23  ;;  %118 = vst [vmem:[#allocation12] sm:$0xff] %v102_v24 }
  0x49   :  { %166 = vmatpush1.msra.mxu0 %v102_v24  ;;  %264 = vmatpush1.msra.mxu1 %v102_v24 }
  0x4a   :  { %259 = vmatmul.mubr.msk.f32.vlgmr.msra.gmra.mxu0 %vm128_vm0, %v122_v25  ;;  %260 = vmatmul.mubr.msk.f32.vlgmr.msra.gmra.mxu1 %vm128_vm0, %v123_v26 }
  0x4b   :  { %376 = shalt.err (!%p373_p10)
}
  0x4c   :  { %231 = dma.vmem_to_hbm [thread:$0]  %s226_s24, 512, %s505_s5, [#allocation4], %s419_s26, %s419_s26, %s420_s27   ;;  %v124_v27 = vld [vmem:[#allocation9] sm:$0xff]  ;;  %v126_v28 = vld [vmem:[#allocation9 + $0x10] sm:$0xff]  ;;  %v125_v31 = vld [vmem:[#allocation9 + $0x8] sm:$0xff] }
  0x4d   :  { %v127_v32 = vld [vmem:[#allocation9 + $0x18] sm:$0xff]  ;;  %s428_s30 = smov [#allocation13]  }
  0x4e   :  { %s237_s7 = sshll.u32 %s428_s30, 4  ;;  %s238_s7 = int_to_ptr.vmem [resolvable:$true] %s237_s7 }
  0x4f   :  { %s385_s5 = scalar_lea.vmem %s238_s7, 512  ;;  %p390_p12 = scmp.lt.s32.totalorder %s238_s7, %s238_s7 }
  0x50   :  { %p386_p11 = scmp.ne.s32.totalorder %s238_s7, %s385_s5  ;;  %p391_p13 = scmp.lt.s32.totalorder %s385_s5, %s385_s5 }
  0x52   :  { %p392_p0 = por %p391_p13, %p390_p12 }
  0x54   :  { %p393_p1 = pnand %p392_p0, %p386_p11 }
 0x10a   :  { %v201_v29 = vpop.f32.mrf.mxu0  ;;  %v207_v30 = vpop.f32.mrf.mxu1 }
 0x10b   :  { %v202_v33 = vadd.f32 %v201_v29, %v124_v27  ;;  %v208_v34 = vadd.f32 %v207_v30, %v126_v28 }
 0x10c   :  { %v203_v35 = vpop.f32.mrf.mxu0  ;;  %v209_v36 = vpop.f32.mrf.mxu1 }
 0x10d   :  { %v212_v37 = vmax.f32 %v202_v33, 0.0  ;;  %v214_v38 = vmax.f32 %v208_v34, 0.0  ;;  %v204_v39 = vadd.f32 %v203_v35, %v125_v31  ;;  %v210_v40 = vadd.f32 %v209_v36, %v127_v32 }
 0x10f   :  { %216 = vst [vmem:[#allocation13] sm:$0xff] %v212_v37  ;;  %218 = vst [vmem:[#allocation13 + $0x10] sm:$0xff] %v214_v38  ;;  %v213_v41 = vmax.f32 %v204_v39, 0.0  ;;  %v215_v42 = vmax.f32 %v210_v40, 0.0 }
 0x111   :  { %217 = vst [vmem:[#allocation13 + $0x8] sm:$0xff] %v213_v41  ;;  %219 = vst [vmem:[#allocation13 + $0x18] sm:$0xff] %v215_v42 }
 0x112   :  { %396 = shalt.err (!%p393_p1)
}
 0x113   :  { %243 = dma.vmem_to_hbm [thread:$0]  %s238_s7, 512, %s506_s6, [#allocation14], %s419_s26, %s419_s26, %s420_s27  }
 0x114   :  { %413 = dma.done.wait [#allocation4], 512  }
 0x115   :  { %414 = vsyncadd [#allocation4], 4294966784 }
 0x116   :  { %415 = dma.done.wait [#allocation14], 512  }
 0x117   :  { %416 = vsyncadd [#allocation14], 4294966784 }
 0x118   :  { %250 = vsyncpa [#allocation3], 1 }
 0x119   :  { %251 = vsyncpa [#allocation8], 1 }
 0x11a   :  { %252 = vsyncpa [#allocation11], 1 }
 0x11b   :  { %253 = vsyncpa [#allocation4], 1 }
 0x11c   :  { %254 = vsyncpa [#allocation14], 1 }
 0x11d   :  { %255 = vsyncpa [#allocation5], 1 }

</bundles_post_ra>
